<compile_context>
chip_gen: v7x
topology: tpu7x:2x2x1
jax: 0.10.0
libtpu: 0.0.40
codegen_flags: <defaults>
</compile_context>

<pallas_src>
import jax
import jax.numpy as jnp
from jax import lax
from jax.experimental import pallas as pl
from jax.experimental.pallas import tpu as pltpu

FEAT_DIM = 512
PROJ_DIM = 128
BN_EPS = 1e-5
NORM_EPS = 1e-12


def _round_up(x, m):
    return (x + m - 1) // m * m


def _pick_vmem_limit_bytes():
    """Per-generation scoped-VMEM budget (leave headroom, don't claim full physical)."""
    try:
        cap = int(pltpu.get_tpu_info().vmem_capacity_bytes)
    except Exception:
        cap = 64 * 1024 * 1024              # conservative: assume v7x (64 MiB / TC)
    if cap <= 64 * 1024 * 1024:
        return 52 * 1024 * 1024             # v7x: headroom for compiler scratch / sems
    return 100 * 1024 * 1024                # v5e / v6e: 128 MiB physical


def _pick_hw_chunk(tb, c, hw, x_budget_bytes):
    """Largest multiple-of-128 HW chunk whose double-buffered bf16 x tile fits budget."""
    c_pad = _round_up(max(c, 1), 16)                       # bf16 sublane padding
    max_chunk = x_budget_bytes // (tb * c_pad * 2 * 2)     # 2 B/elt, 2 buffers
    max_chunk = max(128, (max_chunk // 128) * 128)
    max_chunk = min(max_chunk, 16384)
    return min(_round_up(hw, 128), max_chunk)


# ---------------------------------------------------------------------------
# Kernel A   grid = (batch tiles ["parallel"], HW chunks ["arbitrary"])
#   streaming global-avg-pool (bf16 in, f32 accumulate), stand-in backbone
#   1x1 linear + ReLU -> 512, projection Linear(512,512,bias=False),
#   L2-normalized features, per-tile partial BatchNorm statistics.
# ---------------------------------------------------------------------------
def _backbone_kernel(x_ref, wc_ref, w1_ref, featn_ref, h_ref, stats_ref, xsum_ref):
    s = pl.program_id(1)

    @pl.when(s == 0)
    def _():
        xsum_ref[...] = jnp.zeros_like(xsum_ref)

    # lane-dense spatial reduction of this HW chunk (bf16 load, f32 accumulate)
    xsum_ref[...] += jnp.sum(x_ref[...].astype(jnp.float32), axis=-1)   # (TB, C)

    @pl.when(s == pl.num_programs(1) - 1)
    def _():
        xm = xsum_ref[...]                       # pooled sum; 1/HW folded into wc

        # bf16 operands, f32 MXU accumulation
        feats = jnp.maximum(
            jnp.dot(xm.astype(jnp.bfloat16), wc_ref[...],
                    preferred_element_type=jnp.float32), 0.0)        # (TB, 512)
        h = jnp.dot(feats.astype(jnp.bfloat16), w1_ref[...],
                    preferred_element_type=jnp.float32)              # (TB, 512)

        # F.normalize(feats, dim=-1): x * rsqrt(max(sum(x^2), eps^2))
        f_sq = jnp.sum(feats * feats, axis=-1, keepdims=True)
        featn_ref[...] = feats * lax.rsqrt(jnp.maximum(f_sq, NORM_EPS * NORM_EPS))

        h_ref[...] = h.astype(h_ref.dtype)       # bf16 intermediate writeback

        # partial BatchNorm statistics (direct stores, no concat/reshape);
        # zero-padded batch rows give h == 0 (no bias before BN), so sums are exact.
        stats_ref[0, 0:1, :] = jnp.sum(h, axis=0, keepdims=True)
        stats_ref[0, 1:2, :] = jnp.sum(h * h, axis=0, keepdims=True)


# ---------------------------------------------------------------------------
# Kernel B   grid = (large batch tiles ["parallel"])
#   full-batch BatchNorm1d(512) via precomputed scale/shift, ReLU,
#   Linear(512,128,bias=True), L2 normalize.
# ---------------------------------------------------------------------------
def _head_kernel(h_ref, scale_ref, shift_ref, w2_ref, b2_ref, outn_ref):
    h_bn = jnp.maximum(
        h_ref[...].astype(jnp.float32) * scale_ref[...] + shift_ref[...], 0.0)

    out = jnp.dot(h_bn.astype(jnp.bfloat16), w2_ref[...],
                  preferred_element_type=jnp.float32) + b2_ref[...]   # (TB_B, 128)

    o_sq = jnp.sum(out * out, axis=-1, keepdims=True)
    outn_ref[...] = out * lax.rsqrt(jnp.maximum(o_sq, NORM_EPS * NORM_EPS))


def simclr_forward(x_nchw, params):
    """x_nchw: (B, C, H, W). Returns (F.normalize(feats), F.normalize(projection)),
    matching Model.forward: ((B, 512), (B, 128))."""
    B, C, H, W = x_nchw.shape
    HW = H * W

    # ---- batch tiling --------------------------------------------------------
    if B >= 256:
        TB = 256                       # fills the 256-wide MXU M dim on v6e/v7x
    elif B >= 128:
        TB = 128
    else:
        TB = _round_up(B, 8)
    B_pad = _round_up(B, TB)
    num_tiles = B_pad // TB

    # ---- spatial (HW) blocking ----------------------------------------------
    hw_chunk = _pick_hw_chunk(TB, C, HW, x_budget_bytes=24 * 1024 * 1024)
    HW_pad = _round_up(HW, hw_chunk)
    num_hw = HW_pad // hw_chunk

    # bf16 x stream: pure reshape of NCHW (no transpose / extra HBM pass),
    # spatial axis on lanes.  Zero padding is exact: the pool is a plain sum
    # (1/true-HW folded into wc) and there is no bias before BatchNorm, so
    # padded batch rows produce h == 0 and don't perturb the batch statistics.
    x = x_nchw.reshape(B, C, HW).astype(jnp.bfloat16)
    if B_pad != B or HW_pad != HW:
        x = jnp.pad(x, ((0, B_pad - B), (0, 0), (0, HW_pad - HW)))

    # weights: cast to bf16 once; fold pooling scale 1/HW into wc
    wc = (params["wc"].astype(jnp.float32) * (1.0 / HW)).astype(jnp.bfloat16)
    w1 = params["w1"].astype(jnp.bfloat16)
    w2 = params["w2"].astype(jnp.bfloat16)
    gamma = params["gamma"].astype(jnp.float32)
    beta = params["beta"].astype(jnp.float32)
    b2 = params["b2"].reshape(1, PROJ_DIM).astype(jnp.float32)

    vmem_limit = _pick_vmem_limit_bytes()

    # ---- kernel A ------------------------------------------------------------
    featn, h, stats = pl.pallas_call(
        _backbone_kernel,
        grid=(num_tiles, num_hw),
        in_specs=[
            pl.BlockSpec((TB, C, hw_chunk), lambda i, s: (i, 0, s)),
            pl.BlockSpec((C, FEAT_DIM), lambda i, s: (0, 0)),
            pl.BlockSpec((FEAT_DIM, FEAT_DIM), lambda i, s: (0, 0)),
        ],
        out_specs=(
            pl.BlockSpec((TB, FEAT_DIM), lambda i, s: (i, 0)),
            pl.BlockSpec((TB, FEAT_DIM), lambda i, s: (i, 0)),
            pl.BlockSpec((1, 2, FEAT_DIM), lambda i, s: (i, 0, 0)),
        ),
        out_shape=(
            jax.ShapeDtypeStruct((B_pad, FEAT_DIM), jnp.float32),
            jax.ShapeDtypeStruct((B_pad, FEAT_DIM), jnp.bfloat16),
            jax.ShapeDtypeStruct((num_tiles, 2, FEAT_DIM), jnp.float32),
        ),
        scratch_shapes=[pltpu.VMEM((TB, C), jnp.float32)],
        compiler_params=pltpu.CompilerParams(
            dimension_semantics=("parallel", "arbitrary"),
            vmem_limit_bytes=vmem_limit),
    )(x, wc, w1)

    # ---- tiny full-batch BN reduction, hoisted out of the kernel --------------
    totals = jnp.sum(stats, axis=0)                           # (2, 512)
    mean = totals[0] * (1.0 / B)
    var = jnp.maximum(totals[1] * (1.0 / B) - mean * mean, 0.0)   # biased (training BN)
    bn_scale = (gamma * lax.rsqrt(var + BN_EPS)).reshape(1, FEAT_DIM)
    bn_shift = (beta - mean * bn_scale[0]).reshape(1, FEAT_DIM)

    # ---- kernel B: large batch tile (overhead-bound otherwise) ----------------
    tb_b = TB
    for k in range(min(num_tiles, max(1, 1024 // TB)), 0, -1):
        if num_tiles % k == 0:
            tb_b = k * TB
            break
    num_tiles_b = B_pad // tb_b

    outn = pl.pallas_call(
        _head_kernel,
        grid=(num_tiles_b,),
        in_specs=[
            pl.BlockSpec((tb_b, FEAT_DIM), lambda i: (i, 0)),
            pl.BlockSpec((1, FEAT_DIM), lambda i: (0, 0)),
            pl.BlockSpec((1, FEAT_DIM), lambda i: (0, 0)),
            pl.BlockSpec((FEAT_DIM, PROJ_DIM), lambda i: (0, 0)),
            pl.BlockSpec((1, PROJ_DIM), lambda i: (0, 0)),
        ],
        out_specs=pl.BlockSpec((tb_b, PROJ_DIM), lambda i: (i, 0)),
        out_shape=jax.ShapeDtypeStruct((B_pad, PROJ_DIM), jnp.float32),
        compiler_params=pltpu.CompilerParams(
            dimension_semantics=("parallel",),
            vmem_limit_bytes=vmem_limit),
    )(h, bn_scale, bn_shift, w2, b2)

    return featn[:B], outn[:B]


def init_params(key, in_channels):
    k0, k1, k2, k3 = jax.random.split(key, 4)
    return {
        # stand-in backbone 1x1 "conv" weights (Cin -> 512)
        "wc": jax.random.normal(k0, (in_channels, FEAT_DIM), jnp.float32) * 0.05,
        # projection head: Linear(512, 512, bias=False)
        "w1": jax.random.normal(k1, (FEAT_DIM, FEAT_DIM), jnp.float32) * 0.02,
        # BatchNorm1d(512) affine params (PyTorch init: weight=1, bias=0)
        "gamma": jnp.ones((FEAT_DIM,), jnp.float32),
        "beta": jnp.zeros((FEAT_DIM,), jnp.float32),
        # Linear(512, 128, bias=True)
        "w2": jax.random.normal(k2, (FEAT_DIM, PROJ_DIM), jnp.float32) * 0.02,
        "b2": jax.random.normal(k3, (PROJ_DIM,), jnp.float32) * 0.01,
    }


if __name__ == "__main__":
    key = jax.random.PRNGKey(0)
    kx, kp = jax.random.split(key)

    B, C, H, W = 8, 4, 16, 16
    x = jax.random.normal(kx, (B, C, H, W), jnp.float32)
    params = init_params(kp, C)

    feat_n, out_n = jax.jit(simclr_forward)(x, params)
    jax.block_until_ready((feat_n, out_n))

    assert feat_n.shape == (B, FEAT_DIM) and out_n.shape == (B, PROJ_DIM)
    # sanity: rows are unit-norm (normalization done in f32 inside the kernels)
    assert bool(jnp.allclose(jnp.linalg.norm(feat_n, axis=-1), 1.0, atol=1e-3))
    assert bool(jnp.allclose(jnp.linalg.norm(out_n, axis=-1), 1.0, atol=1e-3))
    print("KERNEL_OK")
</pallas_src>

<mosaic_0001>
module attributes {stable_mosaic.version = 11 : i64} {
  func.func @_backbone_kernel(%arg0: i32, %arg1: i32, %arg2: memref<8x4x256xbf16, #tpu.memory_space<vmem>>, %arg3: memref<4x512xbf16, #tpu.memory_space<vmem>>, %arg4: memref<512x512xbf16, #tpu.memory_space<vmem>>, %arg5: memref<8x512xf32, #tpu.memory_space<vmem>>, %arg6: memref<8x512xbf16, #tpu.memory_space<vmem>>, %arg7: memref<1x2x512xf32, #tpu.memory_space<vmem>>, %arg8: memref<8x4xf32, #tpu.memory_space<vmem>>) attributes {dimension_semantics = [#tpu.dimension_semantics<parallel>, #tpu.dimension_semantics<arbitrary>], iteration_bounds = array<i64: 1, 1>, scalar_prefetch = 0 : i64, scratch_operands = 1 : i64, tpu.core_type = #tpu.core_type<tc>, window_params = [{transform_indices = @transform_0, window_bounds = array<i64: 8, 4, 256>}, {pipeline_mode = #tpu.pipeline_mode<synchronous>, transform_indices = @transform_1, window_bounds = array<i64: 4, 512>}, {pipeline_mode = #tpu.pipeline_mode<synchronous>, transform_indices = @transform_2, window_bounds = array<i64: 512, 512>}, {transform_indices = @transform_3, window_bounds = array<i64: 8, 512>}, {transform_indices = @transform_4, window_bounds = array<i64: 8, 512>}, {transform_indices = @transform_5, window_bounds = array<i64: 1, 2, 512>}]} {
    %c0_i32 = arith.constant 0 : i32
    %0 = arith.cmpi eq, %arg1, %c0_i32 : i32
    %1 = arith.extui %0 : i1 to i32
    %c0_i32_0 = arith.constant 0 : i32
    %2 = arith.cmpi ne, %1, %c0_i32_0 : i32
    scf.if %2 {
      %cst_9 = arith.constant 0.000000e+00 : f32
      %12 = vector.broadcast %cst_9 : f32 to vector<8x4xf32>
      %c0_10 = arith.constant 0 : index
      %c0_11 = arith.constant 0 : index
      %13 = vector.load %arg8[%c0_10, %c0_11] : memref<8x4xf32, #tpu.memory_space<vmem>>, vector<8x4xf32>
      tpu.vector_store %arg8[%c0_10, %c0_11], %12 {strides = array<i32>} : memref<8x4xf32, #tpu.memory_space<vmem>>, vector<8x4xf32>,
    } else {
    }
    %c0 = arith.constant 0 : index
    %c0_1 = arith.constant 0 : index
    %3 = vector.load %arg8[%c0, %c0_1] : memref<8x4xf32, #tpu.memory_space<vmem>>, vector<8x4xf32>
    %c0_2 = arith.constant 0 : index
    %c0_3 = arith.constant 0 : index
    %c0_4 = arith.constant 0 : index
    %4 = vector.load %arg2[%c0_2, %c0_3, %c0_4] : memref<8x4x256xbf16, #tpu.memory_space<vmem>>, vector<8x4x256xbf16>
    %5 = arith.extf %4 : vector<8x4x256xbf16> to vector<8x4x256xf32>
    %cst = arith.constant dense<0.000000e+00> : vector<8x4xf32>
    %6 = vector.multi_reduction <add>, %5, %cst [2] : vector<8x4x256xf32> to vector<8x4xf32>
    %7 = arith.addf %3, %6 : vector<8x4xf32>
    %c0_5 = arith.constant 0 : index
    %c0_6 = arith.constant 0 : index
    %8 = vector.load %arg8[%c0_5, %c0_6] : memref<8x4xf32, #tpu.memory_space<vmem>>, vector<8x4xf32>
    tpu.vector_store %arg8[%c0_5, %c0_6], %7 {strides = array<i32>} : memref<8x4xf32, #tpu.memory_space<vmem>>, vector<8x4xf32>,
    %c0_i32_7 = arith.constant 0 : i32
    %9 = arith.cmpi eq, %arg1, %c0_i32_7 : i32
    %10 = arith.extui %9 : i1 to i32
    %c0_i32_8 = arith.constant 0 : i32
    %11 = arith.cmpi ne, %10, %c0_i32_8 : i32
    scf.if %11 {
      %c0_9 = arith.constant 0 : index
      %c0_10 = arith.constant 0 : index
      %12 = vector.load %arg8[%c0_9, %c0_10] : memref<8x4xf32, #tpu.memory_space<vmem>>, vector<8x4xf32>
      %13 = arith.truncf %12 : vector<8x4xf32> to vector<8x4xbf16>
      %c0_11 = arith.constant 0 : index
      %c0_12 = arith.constant 0 : index
      %14 = vector.load %arg3[%c0_11, %c0_12] : memref<4x512xbf16, #tpu.memory_space<vmem>>, vector<4x512xbf16>
      %cst_13 = arith.constant dense<0.000000e+00> : vector<8x512xf32>
      %15 = tpu.matmul %13, %14, %cst_13 {dimension_numbers = #tpu.dot_dimension_numbers<[1], [0], [0], [1], [0, 0, 1, 1], [], []>} : vector<8x4xbf16>, vector<4x512xbf16>, vector<8x512xf32> -> vector<8x512xf32>
      %cst_14 = arith.constant 0.000000e+00 : f32
      %16 = vector.broadcast %cst_14 : f32 to vector<8x512xf32>
      %17 = arith.maximumf %15, %16 : vector<8x512xf32>
      %18 = arith.truncf %17 : vector<8x512xf32> to vector<8x512xbf16>
      %c0_15 = arith.constant 0 : index
      %c0_16 = arith.constant 0 : index
      %19 = vector.load %arg4[%c0_15, %c0_16] : memref<512x512xbf16, #tpu.memory_space<vmem>>, vector<512x512xbf16>
      %cst_17 = arith.constant dense<0.000000e+00> : vector<8x512xf32>
      %20 = tpu.matmul %18, %19, %cst_17 {dimension_numbers = #tpu.dot_dimension_numbers<[1], [0], [0], [1], [0, 0, 1, 1], [], []>} : vector<8x512xbf16>, vector<512x512xbf16>, vector<8x512xf32> -> vector<8x512xf32>
      %21 = arith.mulf %17, %17 : vector<8x512xf32>
      %cst_18 = arith.constant dense<0.000000e+00> : vector<8xf32>
      %22 = vector.multi_reduction <add>, %21, %cst_18 [1] : vector<8x512xf32> to vector<8xf32>
      %23 = vector.shape_cast %22 : vector<8xf32> to vector<8x1xf32>
      %cst_19 = arith.constant 1.000000e-24 : f32
      %24 = vector.broadcast %cst_19 : f32 to vector<8x1xf32>
      %25 = arith.maximumf %23, %24 : vector<8x1xf32>
      %26 = math.rsqrt %25 : vector<8x1xf32>
      %27 = vector.broadcast %26 : vector<8x1xf32> to vector<8x512xf32>
      %28 = arith.mulf %17, %27 : vector<8x512xf32>
      %c0_20 = arith.constant 0 : index
      %c0_21 = arith.constant 0 : index
      %29 = vector.load %arg5[%c0_20, %c0_21] : memref<8x512xf32, #tpu.memory_space<vmem>>, vector<8x512xf32>
      tpu.vector_store %arg5[%c0_20, %c0_21], %28 {strides = array<i32>} : memref<8x512xf32, #tpu.memory_space<vmem>>, vector<8x512xf32>,
      %30 = arith.truncf %20 : vector<8x512xf32> to vector<8x512xbf16>
      %c0_22 = arith.constant 0 : index
      %c0_23 = arith.constant 0 : index
      %31 = vector.load %arg6[%c0_22, %c0_23] : memref<8x512xbf16, #tpu.memory_space<vmem>>, vector<8x512xbf16>
      tpu.vector_store %arg6[%c0_22, %c0_23], %30 {strides = array<i32>} : memref<8x512xbf16, #tpu.memory_space<vmem>>, vector<8x512xbf16>,
      %cst_24 = arith.constant dense<0.000000e+00> : vector<512xf32>
      %32 = vector.multi_reduction <add>, %20, %cst_24 [0] : vector<8x512xf32> to vector<512xf32>
      %33 = vector.shape_cast %32 : vector<512xf32> to vector<1x512xf32>
      %c0_25 = arith.constant 0 : index
      %c0_26 = arith.constant 0 : index
      %c0_27 = arith.constant 0 : index
      %34 = vector.load %arg7[%c0_25, %c0_26, %c0_27] : memref<1x2x512xf32, #tpu.memory_space<vmem>>, vector<1x1x512xf32>
      %35 = vector.shape_cast %34 : vector<1x1x512xf32> to vector<1x512xf32>
      %36 = vector.shape_cast %33 : vector<1x512xf32> to vector<1x1x512xf32>
      tpu.vector_store %arg7[%c0_25, %c0_26, %c0_27], %36 {strides = array<i32>} : memref<1x2x512xf32, #tpu.memory_space<vmem>>, vector<1x1x512xf32>,
      %37 = arith.mulf %20, %20 : vector<8x512xf32>
      %cst_28 = arith.constant dense<0.000000e+00> : vector<512xf32>
      %38 = vector.multi_reduction <add>, %37, %cst_28 [0] : vector<8x512xf32> to vector<512xf32>
      %39 = vector.shape_cast %38 : vector<512xf32> to vector<1x512xf32>
      %c0_29 = arith.constant 0 : index
      %c1 = arith.constant 1 : index
      %c0_30 = arith.constant 0 : index
      %40 = vector.load %arg7[%c0_29, %c1, %c0_30] : memref<1x2x512xf32, #tpu.memory_space<vmem>>, vector<1x1x512xf32>
      %41 = vector.shape_cast %40 : vector<1x1x512xf32> to vector<1x512xf32>
      %42 = vector.shape_cast %39 : vector<1x512xf32> to vector<1x1x512xf32>
      tpu.vector_store %arg7[%c0_29, %c1, %c0_30], %42 {strides = array<i32>} : memref<1x2x512xf32, #tpu.memory_space<vmem>>, vector<1x1x512xf32>,
    } else {
    }
    return
  }
  func.func @transform_0(%arg0: i32, %arg1: i32) -> (i32, i32, i32) {
    %c0_i32 = arith.constant 0 : i32
    %c0_i32_0 = arith.constant 0 : i32
    return %arg0, %c0_i32, %arg1 : i32, i32, i32
  }
  func.func @transform_1(%arg0: i32, %arg1: i32) -> (i32, i32) {
    %c0_i32 = arith.constant 0 : i32
    %c0_i32_0 = arith.constant 0 : i32
    %c0_i32_1 = arith.constant 0 : i32
    return %c0_i32, %c0_i32_0 : i32, i32
  }
  func.func @transform_2(%arg0: i32, %arg1: i32) -> (i32, i32) {
    %c0_i32 = arith.constant 0 : i32
    %c0_i32_0 = arith.constant 0 : i32
    %c0_i32_1 = arith.constant 0 : i32
    return %c0_i32, %c0_i32_0 : i32, i32
  }
  func.func @transform_3(%arg0: i32, %arg1: i32) -> (i32, i32) {
    %c0_i32 = arith.constant 0 : i32
    %c0_i32_0 = arith.constant 0 : i32
    return %arg0, %c0_i32 : i32, i32
  }
  func.func @transform_4(%arg0: i32, %arg1: i32) -> (i32, i32) {
    %c0_i32 = arith.constant 0 : i32
    %c0_i32_0 = arith.constant 0 : i32
    return %arg0, %c0_i32 : i32, i32
  }
  func.func @transform_5(%arg0: i32, %arg1: i32) -> (i32, i32, i32) {
    %c0_i32 = arith.constant 0 : i32
    %c0_i32_0 = arith.constant 0 : i32
    %c0_i32_1 = arith.constant 0 : i32
    return %arg0, %c0_i32, %c0_i32_0 : i32, i32, i32
  }
}

module attributes {stable_mosaic.version = 11 : i64} {
  func.func @_head_kernel(%arg0: i32, %arg1: memref<8x512xbf16, #tpu.memory_space<vmem>>, %arg2: memref<1x512xf32, #tpu.memory_space<vmem>>, %arg3: memref<1x512xf32, #tpu.memory_space<vmem>>, %arg4: memref<512x128xbf16, #tpu.memory_space<vmem>>, %arg5: memref<1x128xf32, #tpu.memory_space<vmem>>, %arg6: memref<8x128xf32, #tpu.memory_space<vmem>>) attributes {dimension_semantics = [#tpu.dimension_semantics<parallel>], iteration_bounds = array<i64: 1>, scalar_prefetch = 0 : i64, scratch_operands = 0 : i64, tpu.core_type = #tpu.core_type<tc>, window_params = [{transform_indices = @transform_0, window_bounds = array<i64: 8, 512>}, {pipeline_mode = #tpu.pipeline_mode<synchronous>, transform_indices = @transform_1, window_bounds = array<i64: 1, 512>}, {pipeline_mode = #tpu.pipeline_mode<synchronous>, transform_indices = @transform_2, window_bounds = array<i64: 1, 512>}, {pipeline_mode = #tpu.pipeline_mode<synchronous>, transform_indices = @transform_3, window_bounds = array<i64: 512, 128>}, {pipeline_mode = #tpu.pipeline_mode<synchronous>, transform_indices = @transform_4, window_bounds = array<i64: 1, 128>}, {transform_indices = @transform_5, window_bounds = array<i64: 8, 128>}]} {
    %c0 = arith.constant 0 : index
    %c0_0 = arith.constant 0 : index
    %0 = vector.load %arg1[%c0, %c0_0] : memref<8x512xbf16, #tpu.memory_space<vmem>>, vector<8x512xbf16>
    %1 = arith.extf %0 : vector<8x512xbf16> to vector<8x512xf32>
    %c0_1 = arith.constant 0 : index
    %c0_2 = arith.constant 0 : index
    %2 = vector.load %arg2[%c0_1, %c0_2] : memref<1x512xf32, #tpu.memory_space<vmem>>, vector<1x512xf32>
    %3 = vector.broadcast %2 : vector<1x512xf32> to vector<8x512xf32>
    %4 = arith.mulf %1, %3 : vector<8x512xf32>
    %c0_3 = arith.constant 0 : index
    %c0_4 = arith.constant 0 : index
    %5 = vector.load %arg3[%c0_3, %c0_4] : memref<1x512xf32, #tpu.memory_space<vmem>>, vector<1x512xf32>
    %6 = vector.broadcast %5 : vector<1x512xf32> to vector<8x512xf32>
    %7 = arith.addf %4, %6 : vector<8x512xf32>
    %cst = arith.constant 0.000000e+00 : f32
    %8 = vector.broadcast %cst : f32 to vector<8x512xf32>
    %9 = arith.maximumf %7, %8 : vector<8x512xf32>
    %10 = arith.truncf %9 : vector<8x512xf32> to vector<8x512xbf16>
    %c0_5 = arith.constant 0 : index
    %c0_6 = arith.constant 0 : index
    %11 = vector.load %arg4[%c0_5, %c0_6] : memref<512x128xbf16, #tpu.memory_space<vmem>>, vector<512x128xbf16>
    %cst_7 = arith.constant dense<0.000000e+00> : vector<8x128xf32>
    %12 = tpu.matmul %10, %11, %cst_7 {dimension_numbers = #tpu.dot_dimension_numbers<[1], [0], [0], [1], [0, 0, 1, 1], [], []>} : vector<8x512xbf16>, vector<512x128xbf16>, vector<8x128xf32> -> vector<8x128xf32>
    %c0_8 = arith.constant 0 : index
    %c0_9 = arith.constant 0 : index
    %13 = vector.load %arg5[%c0_8, %c0_9] : memref<1x128xf32, #tpu.memory_space<vmem>>, vector<1x128xf32>
    %14 = vector.broadcast %13 : vector<1x128xf32> to vector<8x128xf32>
    %15 = arith.addf %12, %14 : vector<8x128xf32>
    %16 = arith.mulf %15, %15 : vector<8x128xf32>
    %cst_10 = arith.constant dense<0.000000e+00> : vector<8xf32>
    %17 = vector.multi_reduction <add>, %16, %cst_10 [1] : vector<8x128xf32> to vector<8xf32>
    %18 = vector.shape_cast %17 : vector<8xf32> to vector<8x1xf32>
    %cst_11 = arith.constant 1.000000e-24 : f32
    %19 = vector.broadcast %cst_11 : f32 to vector<8x1xf32>
    %20 = arith.maximumf %18, %19 : vector<8x1xf32>
    %21 = math.rsqrt %20 : vector<8x1xf32>
    %22 = vector.broadcast %21 : vector<8x1xf32> to vector<8x128xf32>
    %23 = arith.mulf %15, %22 : vector<8x128xf32>
    %c0_12 = arith.constant 0 : index
    %c0_13 = arith.constant 0 : index
    %24 = vector.load %arg6[%c0_12, %c0_13] : memref<8x128xf32, #tpu.memory_space<vmem>>, vector<8x128xf32>
    tpu.vector_store %arg6[%c0_12, %c0_13], %23 {strides = array<i32>} : memref<8x128xf32, #tpu.memory_space<vmem>>, vector<8x128xf32>,
    return
  }
  func.func @transform_0(%arg0: i32) -> (i32, i32) {
    %c0_i32 = arith.constant 0 : i32
    %c0_i32_0 = arith.constant 0 : i32
    return %arg0, %c0_i32 : i32, i32
  }
  func.func @transform_1(%arg0: i32) -> (i32, i32) {
    %c0_i32 = arith.constant 0 : i32
    %c0_i32_0 = arith.constant 0 : i32
    %c0_i32_1 = arith.constant 0 : i32
    return %c0_i32, %c0_i32_0 : i32, i32
  }
  func.func @transform_2(%arg0: i32) -> (i32, i32) {
    %c0_i32 = arith.constant 0 : i32
    %c0_i32_0 = arith.constant 0 : i32
    %c0_i32_1 = arith.constant 0 : i32
    return %c0_i32, %c0_i32_0 : i32, i32
  }
  func.func @transform_3(%arg0: i32) -> (i32, i32) {
    %c0_i32 = arith.constant 0 : i32
    %c0_i32_0 = arith.constant 0 : i32
    %c0_i32_1 = arith.constant 0 : i32
    return %c0_i32, %c0_i32_0 : i32, i32
  }
  func.func @transform_4(%arg0: i32) -> (i32, i32) {
    %c0_i32 = arith.constant 0 : i32
    %c0_i32_0 = arith.constant 0 : i32
    %c0_i32_1 = arith.constant 0 : i32
    return %c0_i32, %c0_i32_0 : i32, i32
  }
  func.func @transform_5(%arg0: i32) -> (i32, i32) {
    %c0_i32 = arith.constant 0 : i32
    %c0_i32_0 = arith.constant 0 : i32
    return %arg0, %c0_i32 : i32, i32
  }
}

</mosaic_0001>

<bundles_post_ra>
// kernel: simclr_forward.3
= control target key start
LH: loop header
LB: loop body
LE: loop exit
PB: predicated region body
PF: predicated region fallthrough
CT: control target
= control target key end

     0   :  { %v30_v21 = vlaneseq  ;;  %s742_s0 = inlined_call_operand.vmem [shape: bf16[8,512], index: 0, kind: input, shape index: {}]   ;;  %s743_s1 = inlined_call_operand.vmem [shape: f32[1,512], index: 1, kind: input, shape index: {}]   ;;  %s744_s2 = inlined_call_operand.vmem [shape: f32[1,512], index: 2, kind: input, shape index: {}]   ;;  %s745_s3 = inlined_call_operand.vmem [shape: bf16[512,128], index: 3, kind: input, shape index: {}]   ;;  %s746_s4 = inlined_call_operand.vmem [shape: f32[1,128], index: 4, kind: input, shape index: {}]   ;;  %s747_s5 = inlined_call_operand.hbm [shape: f32[8,128], index: 5, kind: output, shape index: {}]  }
   0x1   :  { %v530_v0 = vld [vmem:[%s745_s3 + $0x40] sm:$0xff]   ;;  %v534_v4 = vld [vmem:[%s745_s3 + $0x48] sm:$0xff]   ;;  %v538_v8 = vld [vmem:[%s745_s3 + $0x50] sm:$0xff]  }
   0x2   :  { %v531_v1 = vld [vmem:[%s745_s3 + $0xc0] sm:$0xff]   ;;  %485 = vmatprep.subr.bf16.mxu0 %v530_v0  ;;  %v535_v5 = vld [vmem:[%s745_s3 + $0xc8] sm:$0xff]   ;;  %v539_v9 = vld [vmem:[%s745_s3 + $0xd0] sm:$0xff]   ;;  %v31_v26 = vshrl.u32 %v30_v21, 7 }
   0x3   :  { %v532_v2 = vld [vmem:[%s745_s3] sm:$0xff]   ;;  %507 = vmatprep.subr.bf16.mxu1 %v531_v1  ;;  %v536_v6 = vld [vmem:[%s745_s3 + $0x8] sm:$0xff]   ;;  %v540_v10 = vld [vmem:[%s745_s3 + $0x10] sm:$0xff]  }
   0x4   :  { %v533_v3 = vld [vmem:[%s745_s3 + $0x80] sm:$0xff]   ;;  %486 = vmatpush3.bf16.msra.mxu0 %v532_v2  ;;  %v537_v7 = vld [vmem:[%s745_s3 + $0x88] sm:$0xff]   ;;  %v541_v11 = vld [vmem:[%s745_s3 + $0x90] sm:$0xff]   ;;  %v36_v31 = vsub.s32 1, %v31_v26  ;;  %v44_v33 = vsub.s32 3, %v31_v26  ;;  %v32_v35 = vsub.s32 0, %v31_v26 }
   0x5   :  { %508 = vmatpush3.bf16.msra.mxu1 %v533_v3  ;;  %487 = vmatprep.subr.bf16.mxu0 %v534_v4  ;;  %v542_v12 = vld [vmem:[%s745_s3 + $0x58] sm:$0xff]   ;;  %v546_v16 = vld [vmem:[%s745_s3 + $0x60] sm:$0xff]   ;;  %v550_v20 = vld [vmem:[%s745_s3 + $0x68] sm:$0xff]   ;;  %v40_v37 = vsub.s32 2, %v31_v26 }
   0x6   :  { %509 = vmatprep.subr.bf16.mxu1 %v535_v5  ;;  %v543_v13 = vld [vmem:[%s745_s3 + $0xd8] sm:$0xff]   ;;  %v547_v17 = vld [vmem:[%s745_s3 + $0xe0] sm:$0xff]   ;;  %v551_v22 = vld [vmem:[%s745_s3 + $0xe8] sm:$0xff]  }
   0x7   :  { %v544_v14 = vld [vmem:[%s745_s3 + $0x18] sm:$0xff]   ;;  %v548_v18 = vld [vmem:[%s745_s3 + $0x20] sm:$0xff]   ;;  %v552_v23 = vld [vmem:[%s745_s3 + $0x28] sm:$0xff]  }
   0x8   :  { %488 = vmatpush3.bf16.msra.mxu0 %v536_v6  ;;  %v545_v15 = vld [vmem:[%s745_s3 + $0x98] sm:$0xff]   ;;  %v549_v19 = vld [vmem:[%s745_s3 + $0xa0] sm:$0xff]   ;;  %v553_v24 = vld [vmem:[%s745_s3 + $0xa8] sm:$0xff]  }
   0x9   :  { %510 = vmatpush3.bf16.msra.mxu1 %v537_v7  ;;  %489 = vmatprep.subr.bf16.mxu0 %v538_v8  ;;  %v554_v25 = vld [vmem:[%s745_s3 + $0x70] sm:$0xff]   ;;  %v558_v30 = vld [vmem:[%s745_s3 + $0x78] sm:$0xff]   ;;  %v22_v38 = vld [vmem:[%s742_s0] sm:$0xff] }
   0xa   :  { %511 = vmatprep.subr.bf16.mxu1 %v539_v9  ;;  %v555_v27 = vld [vmem:[%s745_s3 + $0xf0] sm:$0xff]   ;;  %v559_v32 = vld [vmem:[%s745_s3 + $0xf8] sm:$0xff]   ;;  %v28_v39 = vld [vmem:[%s743_s1] sm:$0xf]  ;;  %v24_v41 = vunpack.c.l.bf16 %v22_v38  ;;  %v25_v42 = vunpack.c.h.bf16 %v22_v38 }
   0xb   :  { %v556_v28 = vld [vmem:[%s745_s3 + $0x30] sm:$0xff]   ;;  %v560_v34 = vld [vmem:[%s745_s3 + $0x38] sm:$0xff]   ;;  %v54_v40 = vld [vmem:[%s744_s2] sm:$0xf]  ;;  %v37_v43 = vrot.slane %v28_v39, %v36_v31 }
   0xc   :  { %490 = vmatpush3.bf16.msra.mxu0 %v540_v10  ;;  %v557_v29 = vld [vmem:[%s745_s3 + $0xb0] sm:$0xff]   ;;  %v561_v36 = vld [vmem:[%s745_s3 + $0xb8] sm:$0xff]   ;;  %v63_v44 = vrot.slane %v54_v40, %v36_v31  ;;  %v23_v45 = vld [vmem:[%s742_s0 + $0x8] sm:$0xff] }
   0xd   :  { %512 = vmatpush3.bf16.msra.mxu1 %v541_v11  ;;  %491 = vmatprep.subr.bf16.mxu0 %v542_v12 }
   0xe   :  { %513 = vmatprep.subr.bf16.mxu1 %v543_v13 }
  0x10   :  { %492 = vmatpush3.bf16.msra.mxu0 %v544_v14 }
  0x11   :  { %514 = vmatpush3.bf16.msra.mxu1 %v545_v15  ;;  %493 = vmatprep.subr.bf16.mxu0 %v546_v16 }
  0x12   :  { %515 = vmatprep.subr.bf16.mxu1 %v547_v17 }
  0x14   :  { %494 = vmatpush3.bf16.msra.mxu0 %v548_v18 }
  0x15   :  { %516 = vmatpush3.bf16.msra.mxu1 %v549_v19  ;;  %495 = vmatprep.subr.bf16.mxu0 %v550_v20 }
  0x16   :  { %517 = vmatprep.subr.bf16.mxu1 %v551_v22 }
  0x18   :  { %496 = vmatpush3.bf16.msra.mxu0 %v552_v23 }
  0x19   :  { %518 = vmatpush3.bf16.msra.mxu1 %v553_v24  ;;  %497 = vmatprep.subr.bf16.mxu0 %v554_v25 }
  0x1a   :  { %519 = vmatprep.subr.bf16.mxu1 %v555_v27 }
  0x1c   :  { %498 = vmatpush3.bf16.msra.mxu0 %v556_v28 }
  0x1d   :  { %520 = vmatpush3.bf16.msra.mxu1 %v557_v29  ;;  %499 = vmatprep.subr.bf16.mxu0 %v558_v30 }
  0x1e   :  { %521 = vmatprep.subr.bf16.mxu1 %v559_v32 }
  0x20   :  { %500 = vmatpush3.bf16.msra.mxu0 %v560_v34 }
  0x21   :  { %522 = vmatpush3.bf16.msra.mxu1 %v561_v36 }
  0x22   :  { %10 = vsyncpa [#allocation3], 0  ;;  %v26_v46 = vunpack.c.l.bf16 %v23_v45  ;;  %v27_v47 = vunpack.c.h.bf16 %v23_v45  ;;  %v45_v48 = vrot.slane %v28_v39, %v44_v33  ;;  %v71_v49 = vrot.slane %v54_v40, %v44_v33  ;;  %v452_v8 = vld [vmem:[%s746_s4] ss:$0 sm:$0xff]  ;;  %s588_s2 = smov [#allocation2]  }
  0x23   :  { %v51_v50 = vmul.f32 %v37_v43, %v25_v42  ;;  %v33_v51 = vrot.slane %v28_v39, %v32_v35  ;;  %v59_v52 = vrot.slane %v54_v40, %v32_v35  ;;  %v41_v53 = vrot.slane %v28_v39, %v40_v37  ;;  %s444_s14 = sshll.u32 %s588_s2, 4  ;;  %s445_s14 = int_to_ptr.vmem [resolvable:$true] %s444_s14 }
  0x24   :  { %v53_v54 = vmul.f32 %v45_v48, %v27_v47  ;;  %v67_v55 = vrot.slane %v54_v40, %v40_v37  ;;  %s564_s4 = scalar_lea.vmem %s445_s14, 128  ;;  %p569_p1 = scmp.lt.s32.totalorder %s445_s14, %s445_s14 }
  0x25   :  { %v77_v56 = vadd.f32 %v63_v44, %v51_v50  ;;  %v50_v57 = vmul.f32 %v33_v51, %v24_v41  ;;  %v52_v58 = vmul.f32 %v41_v53, %v26_v46  ;;  %p565_p0 = scmp.ne.s32.totalorder %s445_s14, %s564_s4  ;;  %p570_p2 = scmp.lt.s32.totalorder %s564_s4, %s564_s4 }
  0x26   :  { %v79_v59 = vadd.f32 %v71_v49, %v53_v54 }
  0x27   :  { %v81_v60 = vmax.f32 %v77_v56, 0.0  ;;  %v76_v61 = vadd.f32 %v59_v52, %v50_v57  ;;  %v78_v62 = vadd.f32 %v67_v55, %v52_v58  ;;  %p571_p3 = por %p570_p2, %p569_p1 }
  0x28   :  { %v83_v63 = vmax.f32 %v79_v59, 0.0 }
  0x29   :  { %v85_v0 = vpack.c.bf16 %v81_v60, %v81_v60  ;;  %v80_v1 = vmax.f32 %v76_v61, 0.0  ;;  %v82_v2 = vmax.f32 %v78_v62, 0.0  ;;  %p572_p4 = pnand %p571_p3, %p565_p0 }
  0x2a   :  { %v87_v3 = vpack.c.bf16 %v83_v63, %v83_v63 }
  0x2b   :  { %383 = vmatprep.mubr.bf16.mxu0 %v85_v0  ;;  %v84_v4 = vpack.c.bf16 %v80_v1, %v80_v1  ;;  %v86_v5 = vpack.c.bf16 %v82_v2, %v82_v2 }
  0x2c   :  { %423 = vmatprep.mubr.bf16.mxu1 %v87_v3 }
  0x2d   :  { %384 = vmatmul.mubr.bf16.vlgmr.msra.gmra.mrb[0].mxu0 %v84_v4  ;;  %424 = vmatmul.mubr.bf16.vlgmr.msra.gmra.mrb[0].mxu1 %v86_v5 }
 0x100   :  { %v501_v6 = vpop.f32.mrb[0].mxu0  ;;  %v523_v7 = vpop.f32.mrb[0].mxu1 }
 0x101   :  { %v502_v9 = vpop.f32.mrb[1].mxu0  ;;  %v524_v10 = vpop.f32.mrb[1].mxu1 }
 0x102   :  { %v503_v11 = vadd.f32 %v502_v9, %v501_v6  ;;  %v525_v12 = vadd.f32 %v524_v10, %v523_v7  ;;  %v504_v13 = vpop.f32.mrb[2].mxu0  ;;  %v526_v14 = vpop.f32.mrb[2].mxu1 }
 0x103   :  { %v505_v15 = vpop.f32.mrb[3].mxu0  ;;  %v527_v16 = vpop.f32.mrb[3].mxu1 }
 0x104   :  { %v386_v17 = vadd.f32 %v503_v11, %v452_v8 }
 0x106   :  { %v426_v18 = vadd.f32 %v525_v12, %v386_v17 }
 0x108   :  { %v431_v19 = vmul.f32 %v426_v18, %v426_v18 }
 0x10a   :  { %432 = vadd.xlane.f32.xlu0 %v431_v19 }
 0x197   :  { %v433_v20 = vpop.xlane.xlu0 %432 }
 0x198   :  { %v434_v21 = vmax.f32 %v433_v20, 1e-24 }
 0x19a   :  { %562 = vrsqrt.f32 %v434_v21 }
 0x1a4   :  { %v563_v22 = vpop.eup %562 }
 0x1a5   :  { %v436_v23 = vmul.f32 %v563_v22, %v426_v18 }
 0x1a7   :  { %437 = vst [vmem:[#allocation2] sm:$0xff] %v436_v23 }
 0x1a8   :  { %575 = shalt.err (!%p572_p4)
}
 0x1a9   :  { %s576_s17 = scalar_lea.hbm %s747_s5, 128 }
 0x1aa   :  { %p577_p5 = scmp.ne.s32.totalorder %s747_s5, %s576_s17  ;;  %p580_p6 = scmp.lt.u32.totalorder %s576_s17, %s747_s5 }
 0x1ac   :  { %p582_p7 = pnand %p580_p6, %p577_p5 }
 0x1ae   :  { %585 = shalt.err (!%p582_p7)
}
 0x1af   :  { %447 = dma.vmem_to_hbm [thread:$0]  %s445_s14, 128, %s747_s5, [#allocation3]  }
 0x1b0   :  { %586 = dma.done.wait [#allocation3], 128  }
 0x1b1   :  { %587 = vsyncadd [#allocation3], 4294967168 }
 0x1b2   :  { %451 = vsyncpa [#allocation3], 1 }

// kernel: simclr_forward.2
= control target key start
LH: loop header
LB: loop body
LE: loop exit
PB: predicated region body
PF: predicated region fallthrough
CT: control target
= control target key end

     0   :  { %vm66_vm0 = vcmask 1043456   ;;  %vm23_vm1 = vcmask 31744   ;;  %v1793_v44 = vmov 0.0   ;;  %v115_v45 = vlaneseq  ;;  %s2315_s0 = inlined_call_operand.vmem [shape: bf16[8,4,256], index: 0, kind: input, shape index: {}]   ;;  %s2316_s1 = inlined_call_operand.vmem [shape: bf16[4,512], index: 1, kind: input, shape index: {}]   ;;  %s2317_s2 = inlined_call_operand.vmem [shape: bf16[512,512], index: 2, kind: input, shape index: {}]   ;;  %s2318_s3 = inlined_call_operand.hbm [shape: f32[8,512], index: 3, kind: output, shape index: {0}]   ;;  %s2319_s4 = inlined_call_operand.vmem [shape: bf16[8,512], index: 4, kind: output, shape index: {1}]   ;;  %s2320_s5 = inlined_call_operand.vmem [shape: f32[1,2,512], index: 5, kind: output, shape index: {2}]  }
   0x1   :  { %v1543_v0 = vld [vmem:[%s2315_s0] sm:$0xff]   ;;  %v1558_v1 = vld [vmem:[%s2315_s0 + $0x8] sm:$0xff]   ;;  %v1559_v2 = vld [vmem:[%s2315_s0 + $0x10] sm:$0xff]   ;;  %24 = vst.msk [vmem:[#allocation2] sm:$0xff] %vm23_vm1, %v1793_v44  ;;  %v1794_v46 = vmov 1983009808  }
   0x2   :  { %v1544_v3 = vunpack.c.l.bf16 %v1543_v0  ;;  %v1548_v4 = vunpack.c.l.bf16 %v1558_v1  ;;  %v1545_v5 = vunpack.c.h.bf16 %v1543_v0  ;;  %v1549_v6 = vunpack.c.h.bf16 %v1558_v1  ;;  %v1560_v7 = vld [vmem:[%s2315_s0 + $0x18] sm:$0xff]   ;;  %v172_v48 = vld [vmem:[%s2316_s1] sm:$0xff] }
   0x3   :  { %v1552_v8 = vunpack.c.l.bf16 %v1559_v2  ;;  %v1553_v9 = vunpack.c.h.bf16 %v1559_v2  ;;  %v1556_v10 = vunpack.c.l.bf16 %v1560_v7  ;;  %v1557_v18 = vunpack.c.h.bf16 %v1560_v7 }
   0x4   :  { %v50_v11 = vcombine.high %v1544_v3, %v1544_v3  ;;  %v67_v12 = vsel %vm66_vm0, %v1544_v3, 0.0  ;;  %v52_v13 = vcombine.high %v1548_v4, %v1548_v4  ;;  %v77_v14 = vsel %vm66_vm0, %v1548_v4, 0.0 }
   0x5   :  { %v51_v15 = vcombine.high %v1545_v5, %v1545_v5  ;;  %v72_v16 = vsel %vm66_vm0, %v1545_v5, 0.0  ;;  %v53_v17 = vcombine.high %v1549_v6, %v1549_v6  ;;  %v82_v21 = vsel %vm66_vm0, %v1549_v6, 0.0 }
   0x6   :  { %v68_v19 = vsel %vm66_vm0, %v50_v11, 0.0  ;;  %v78_v20 = vsel %vm66_vm0, %v52_v13, 0.0  ;;  %v54_v22 = vcombine.high %v1552_v8, %v1552_v8  ;;  %v55_v27 = vcombine.high %v1553_v9, %v1553_v9 }
   0x7   :  { %v69_v23 = vadd.f32 %v68_v19, %v67_v12  ;;  %v79_v24 = vadd.f32 %v78_v20, %v77_v14  ;;  %v73_v25 = vsel %vm66_vm0, %v51_v15, 0.0  ;;  %v83_v26 = vsel %vm66_vm0, %v53_v17, 0.0 }
   0x8   :  { %v74_v28 = vadd.f32 %v73_v25, %v72_v16  ;;  %v84_v29 = vadd.f32 %v83_v26, %v82_v21  ;;  %v87_v30 = vsel %vm66_vm0, %v1552_v8, 0.0  ;;  %v88_v31 = vsel %vm66_vm0, %v54_v22, 0.0 }
   0x9   :  { %70 = vadd.xlane.f32.xlu0 %v69_v23  ;;  %80 = vadd.xlane.f32.xlu1 %v79_v24  ;;  %v92_v32 = vsel %vm66_vm0, %v1553_v9, 0.0  ;;  %v93_v33 = vsel %vm66_vm0, %v55_v27, 0.0  ;;  %v56_v34 = vcombine.high %v1556_v10, %v1556_v10  ;;  %v57_v35 = vcombine.high %v1557_v18, %v1557_v18 }
   0xa   :  { %v89_v36 = vadd.f32 %v88_v31, %v87_v30  ;;  %v94_v37 = vadd.f32 %v93_v33, %v92_v32  ;;  %v97_v38 = vsel %vm66_vm0, %v1556_v10, 0.0  ;;  %v102_v40 = vsel %vm66_vm0, %v1557_v18, 0.0 }
   0xb   :  { %v98_v39 = vsel %vm66_vm0, %v56_v34, 0.0  ;;  %v103_v41 = vsel %vm66_vm0, %v57_v35, 0.0  ;;  %v176_v47 = vunpack.c.l.s4 %v1794_v46  ;;  %v1861_v49 = vshrl.u32 %v115_v45, 7 }
   0xc   :  { %v99_v42 = vadd.f32 %v98_v39, %v97_v38  ;;  %v104_v43 = vadd.f32 %v103_v41, %v102_v40  ;;  %v174_v51 = vcombine.high %v172_v48, %v172_v48  ;;  %v1795_v52 = vmov 0  }
   0xd   :  { %75 = vadd.xlane.f32.xlu0 %v74_v28  ;;  %85 = vadd.xlane.f32.xlu1 %v84_v29  ;;  %v177_v50 = vunpack.c.0.s8 %v176_v47  ;;  %vm194_vm2 = vcmask 1041408  }
   0xe   :  { %239 = vmatprep.mubr.bf16.mxu0 %v1795_v52  ;;  %280 = vmatprep.mubr.bf16.mxu1 %v1795_v52 }
   0xf   :  { %v180_v53 = vsub.s32 %v177_v50, %v1861_v49 }
  0x11   :  { %90 = vadd.xlane.f32.xlu0 %v89_v36  ;;  %95 = vadd.xlane.f32.xlu1 %v94_v37  ;;  %v181_v54 = vrot.slane %v172_v48, %v180_v53  ;;  %v188_v55 = vrot.slane %v174_v51, %v180_v53 }
  0x13   :  { %v189_v56 = vcombine.high %v181_v54, %v181_v54  ;;  %v190_v57 = vcombine.high %v188_v55, %v188_v55  ;;  %v196_v58 = vsel %vm194_vm2, %v181_v54, 0  ;;  %v202_v59 = vsel %vm194_vm2, %v188_v55, 0 }
  0x15   :  { %100 = vadd.xlane.f32.xlu0 %v99_v42  ;;  %105 = vadd.xlane.f32.xlu1 %v104_v43 }
  0x16   :  { %11 = vsyncpa [#allocation4], 0  ;;  %1405 = vmatprep.subr.msk.bf16.mxu0 %vm194_vm2, %v189_v56  ;;  %1407 = vmatprep.subr.msk.bf16.mxu1 %vm194_vm2, %v190_v57  ;;  %v1577_v60 = vld [vmem:[%s2317_s2 + $0x4] ss:$16 sps:$4 sm:$0xff]   ;;  %v1580_v61 = vld [vmem:[%s2317_s2 + $0xc] ss:$16 sps:$4 sm:$0xff]  }
  0x17   :  { %208 = vmatpush1.bf16.msra.mxu0 %v196_v58  ;;  %249 = vmatpush1.bf16.msra.mxu1 %v202_v59  ;;  %v116_v62 = vand.u32 127, %v115_v45  ;;  %vm149_vm3 = vcmask 1041409   ;;  %vm151_vm4 = vcmask 1042434   ;;  %vm153_vm5 = vcmask 1043459   ;;  %v25_v21 = vld [vmem:[#allocation2] sm:$0xff] }
  0x18   :  { %1065 = vmatprep.subr.bf16.mxu0 %v1577_v60  ;;  %1147 = vmatprep.subr.bf16.mxu1 %v1580_v61  ;;  %vm155_vm6 = vcmask 1044484   ;;  %vm157_vm7 = vcmask 1045509   ;;  %vm159_vm8 = vcmask 1046534   ;;  %vm161_vm9 = vcmask 1047559   ;;  %v1575_v26 = vld [vmem:[%s2317_s2] ss:$16 sps:$4 sm:$0xff]  }
  0x19   :  { %v119_v1 = vsub.s32 %v116_v62, %v1861_v49  ;;  %v1578_v27 = vld [vmem:[%s2317_s2 + $0x8] ss:$16 sps:$4 sm:$0xff]   ;;  %v1583_v29 = vld [vmem:[%s2317_s2 + $0x24] ss:$16 sps:$4 sm:$0xff]   ;;  %v1586_v30 = vld [vmem:[%s2317_s2 + $0x2c] ss:$16 sps:$4 sm:$0xff]  }
  0x1a   :  { %v1581_v31 = vld [vmem:[%s2317_s2 + $0x20] ss:$16 sps:$4 sm:$0xff]   ;;  %v1584_v32 = vld [vmem:[%s2317_s2 + $0x28] ss:$16 sps:$4 sm:$0xff]   ;;  %v1589_v33 = vld [vmem:[%s2317_s2 + $0x44] ss:$16 sps:$4 sm:$0xff]  }
  0x1b   :  { %v1592_v34 = vld [vmem:[%s2317_s2 + $0x4c] ss:$16 sps:$4 sm:$0xff]   ;;  %v1587_v35 = vld [vmem:[%s2317_s2 + $0x40] ss:$16 sps:$4 sm:$0xff]   ;;  %v1590_v36 = vld [vmem:[%s2317_s2 + $0x48] ss:$16 sps:$4 sm:$0xff]  }
  0x1c   :  { %v1595_v37 = vld [vmem:[%s2317_s2 + $0x64] ss:$16 sps:$4 sm:$0xff]   ;;  %v1598_v38 = vld [vmem:[%s2317_s2 + $0x6c] ss:$16 sps:$4 sm:$0xff]   ;;  %v1593_v39 = vld [vmem:[%s2317_s2 + $0x60] ss:$16 sps:$4 sm:$0xff]  }
  0x1d   :  { %v1596_v40 = vld [vmem:[%s2317_s2 + $0x68] ss:$16 sps:$4 sm:$0xff]   ;;  %v1601_v41 = vld [vmem:[%s2317_s2 + $0x84] ss:$16 sps:$4 sm:$0xff]   ;;  %v1604_v42 = vld [vmem:[%s2317_s2 + $0x8c] ss:$16 sps:$4 sm:$0xff]  }
  0x1e   :  { %v1599_v43 = vld [vmem:[%s2317_s2 + $0x80] ss:$16 sps:$4 sm:$0xff]   ;;  %v1602_v44 = vld [vmem:[%s2317_s2 + $0x88] ss:$16 sps:$4 sm:$0xff]   ;;  %v1607_v46 = vld [vmem:[%s2317_s2 + $0xa4] ss:$16 sps:$4 sm:$0xff]  }
  0x1f   :  { %v1610_v47 = vld [vmem:[%s2317_s2 + $0xac] ss:$16 sps:$4 sm:$0xff]   ;;  %v1605_v48 = vld [vmem:[%s2317_s2 + $0xa0] ss:$16 sps:$4 sm:$0xff]   ;;  %v1608_v50 = vld [vmem:[%s2317_s2 + $0xa8] ss:$16 sps:$4 sm:$0xff]  }
  0x20   :  { %v1613_v51 = vld [vmem:[%s2317_s2 + $0xc4] ss:$16 sps:$4 sm:$0xff]   ;;  %v1616_v52 = vld [vmem:[%s2317_s2 + $0xcc] ss:$16 sps:$4 sm:$0xff]   ;;  %v1611_v53 = vld [vmem:[%s2317_s2 + $0xc0] ss:$16 sps:$4 sm:$0xff]  }
  0x21   :  { %v1614_v54 = vld [vmem:[%s2317_s2 + $0xc8] ss:$16 sps:$4 sm:$0xff]   ;;  %v1619_v55 = vld [vmem:[%s2317_s2 + $0xe4] ss:$16 sps:$4 sm:$0xff]   ;;  %v1622_v56 = vld [vmem:[%s2317_s2 + $0xec] ss:$16 sps:$4 sm:$0xff]  }
  0x22   :  { %v1617_v57 = vld [vmem:[%s2317_s2 + $0xe0] ss:$16 sps:$4 sm:$0xff]   ;;  %v1620_v58 = vld [vmem:[%s2317_s2 + $0xe8] ss:$16 sps:$4 sm:$0xff]   ;;  %v1625_v59 = vld [vmem:[%s2317_s2 + $0x104] ss:$16 sps:$4 sm:$0xff]  }
  0x23   :  { %v1628_v60 = vld [vmem:[%s2317_s2 + $0x10c] ss:$16 sps:$4 sm:$0xff]   ;;  %v1623_v61 = vld [vmem:[%s2317_s2 + $0x100] ss:$16 sps:$4 sm:$0xff]   ;;  %v1626_v62 = vld [vmem:[%s2317_s2 + $0x108] ss:$16 sps:$4 sm:$0xff]  }
  0x96   :  { %v71_v63 = vpop.xlane.xlu0 %70  ;;  %v81_v0 = vpop.xlane.xlu1 %80 }
  0x97   :  { %v120_v4 = vrot.slane %v71_v63, %v119_v1  ;;  %v128_v7 = vrot.slane %v81_v0, %v119_v1  ;;  %v1631_v63 = vld [vmem:[%s2317_s2 + $0x124] ss:$16 sps:$4 sm:$0xff]   ;;  %v1634_v0 = vld [vmem:[%s2317_s2 + $0x12c] ss:$16 sps:$4 sm:$0xff]  }
  0x9a   :  { %v76_v2 = vpop.xlane.xlu0 %75  ;;  %v86_v3 = vpop.xlane.xlu1 %85 }
  0x9b   :  { %v124_v5 = vrot.slane %v76_v2, %v119_v1  ;;  %v132_v6 = vrot.slane %v86_v3, %v119_v1  ;;  %v1632_v2 = vld [vmem:[%s2317_s2 + $0x128] ss:$16 sps:$4 sm:$0xff]   ;;  %v1637_v3 = vld [vmem:[%s2317_s2 + $0x144] ss:$16 sps:$4 sm:$0xff]  }
  0x9d   :  { %v150_v8 = vsel %vm149_vm3, %v124_v5, %v120_v4  ;;  %v1640_v4 = vld [vmem:[%s2317_s2 + $0x14c] ss:$16 sps:$4 sm:$0xff]   ;;  %v1635_v5 = vld [vmem:[%s2317_s2 + $0x140] ss:$16 sps:$4 sm:$0xff]  }
  0x9e   :  { %v152_v9 = vsel %vm151_vm4, %v128_v7, %v150_v8  ;;  %v91_v10 = vpop.xlane.xlu0 %90  ;;  %v96_v11 = vpop.xlane.xlu1 %95  ;;  %v1643_v7 = vld [vmem:[%s2317_s2 + $0x164] ss:$16 sps:$4 sm:$0xff]   ;;  %v1646_v8 = vld [vmem:[%s2317_s2 + $0x16c] ss:$16 sps:$4 sm:$0xff]  }
  0x9f   :  { %v154_v12 = vsel %vm153_vm5, %v132_v6, %v152_v9  ;;  %v136_v13 = vrot.slane %v91_v10, %v119_v1  ;;  %v140_v14 = vrot.slane %v96_v11, %v119_v1  ;;  %v1638_v6 = vld [vmem:[%s2317_s2 + $0x148] ss:$16 sps:$4 sm:$0xff]   ;;  %v1641_v9 = vld [vmem:[%s2317_s2 + $0x160] ss:$16 sps:$4 sm:$0xff]   ;;  %v1649_v11 = vld [vmem:[%s2317_s2 + $0x184] ss:$16 sps:$4 sm:$0xff]  }
  0xa0   :  { %v1644_v10 = vld [vmem:[%s2317_s2 + $0x168] ss:$16 sps:$4 sm:$0xff]  }
  0xa1   :  { %v156_v15 = vsel %vm155_vm6, %v136_v13, %v154_v12  ;;  %v1652_v12 = vld [vmem:[%s2317_s2 + $0x18c] ss:$16 sps:$4 sm:$0xff]   ;;  %v1647_v13 = vld [vmem:[%s2317_s2 + $0x180] ss:$16 sps:$4 sm:$0xff]  }
  0xa2   :  { %v101_v16 = vpop.xlane.xlu0 %100  ;;  %v106_v17 = vpop.xlane.xlu1 %105  ;;  %v158_v20 = vsel %vm157_vm7, %v140_v14, %v156_v15  ;;  %v1650_v14 = vld [vmem:[%s2317_s2 + $0x188] ss:$16 sps:$4 sm:$0xff]   ;;  %v1655_v15 = vld [vmem:[%s2317_s2 + $0x1a4] ss:$16 sps:$4 sm:$0xff]  }
  0xa3   :  { %v144_v18 = vrot.slane %v101_v16, %v119_v1  ;;  %v148_v19 = vrot.slane %v106_v17, %v119_v1  ;;  %v1629_v1 = vld [vmem:[%s2317_s2 + $0x120] ss:$16 sps:$4 sm:$0xff]   ;;  %v1658_v16 = vld [vmem:[%s2317_s2 + $0x1ac] ss:$16 sps:$4 sm:$0xff]  }
  0xa4   :  { %v1653_v17 = vld [vmem:[%s2317_s2 + $0x1a0] ss:$16 sps:$4 sm:$0xff]  }
  0xa5   :  { %v160_v22 = vsel %vm159_vm8, %v144_v18, %v158_v20  ;;  %v1656_v18 = vld [vmem:[%s2317_s2 + $0x1a8] ss:$16 sps:$4 sm:$0xff]   ;;  %v1664_v20 = vld [vmem:[%s2317_s2 + $0x1cc] ss:$16 sps:$4 sm:$0xff]  }
  0xa6   :  { %v162_v23 = vsel %vm161_vm9, %v148_v19, %v160_v22  ;;  %v1661_v19 = vld [vmem:[%s2317_s2 + $0x1c4] ss:$16 sps:$4 sm:$0xff]   ;;  %v1662_v22 = vld [vmem:[%s2317_s2 + $0x1c8] ss:$16 sps:$4 sm:$0xff]  }
  0xa7   :  { %v164_v24 = vadd.f32 %v162_v23, %v25_v21  ;;  %v1659_v21 = vld [vmem:[%s2317_s2 + $0x1c0] ss:$16 sps:$4 sm:$0xff]   ;;  %v1667_v23 = vld [vmem:[%s2317_s2 + $0x1e4] ss:$16 sps:$4 sm:$0xff]  }
  0xa9   :  { %166 = vst.msk [vmem:[#allocation2] sm:$0xff] %vm23_vm1, %v164_v24  ;;  %v1670_v24 = vld [vmem:[%s2317_s2 + $0x1ec] ss:$16 sps:$4 sm:$0xff]  }
  0xb0   :  { %v170_v25 = vld [vmem:[#allocation2] sm:$0xff] }
  0xb1   :  { %v171_v28 = vpack.c.bf16 %v170_v25, %v170_v25  ;;  %v1665_v25 = vld [vmem:[%s2317_s2 + $0x1e0] ss:$16 sps:$4 sm:$0xff]  }
  0xb3   :  { %1406 = vmatmul.mubr.msk.bf16.vlgmr.msra.gmra.mrb[0].mxu0 %vm23_vm1, %v171_v28  ;;  %1408 = vmatmul.mubr.msk.bf16.vlgmr.msra.gmra.mrb[0].mxu1 %vm23_vm1, %v171_v28  ;;  %v1676_v28 = vld [vmem:[%s2317_s2 + $0x20c] ss:$16 sps:$4 sm:$0xff]  }
  0xb4   :  { %1066 = vmatpush1.bf16.msra.mxu0 %v1575_v26  ;;  %1148 = vmatpush1.bf16.msra.mxu1 %v1578_v27  ;;  %v1668_v26 = vld [vmem:[%s2317_s2 + $0x1e8] ss:$16 sps:$4 sm:$0xff]   ;;  %v1673_v27 = vld [vmem:[%s2317_s2 + $0x204] ss:$16 sps:$4 sm:$0xff]  }
  0xb5   :  { %1067 = vmatprep.subr.bf16.mxu0 %v1583_v29  ;;  %1149 = vmatprep.subr.bf16.mxu1 %v1586_v30 }
  0xb8   :  { %1068 = vmatpush1.bf16.msra.mxu0 %v1581_v31  ;;  %1150 = vmatpush1.bf16.msra.mxu1 %v1584_v32 }
  0xb9   :  { %1069 = vmatprep.subr.bf16.mxu0 %v1589_v33  ;;  %1151 = vmatprep.subr.bf16.mxu1 %v1592_v34 }
  0xbc   :  { %1070 = vmatpush1.bf16.msra.mxu0 %v1587_v35  ;;  %1152 = vmatpush1.bf16.msra.mxu1 %v1590_v36 }
  0xbd   :  { %1071 = vmatprep.subr.bf16.mxu0 %v1595_v37  ;;  %1153 = vmatprep.subr.bf16.mxu1 %v1598_v38 }
  0xc0   :  { %1072 = vmatpush1.bf16.msra.mxu0 %v1593_v39  ;;  %1154 = vmatpush1.bf16.msra.mxu1 %v1596_v40 }
  0xc1   :  { %1073 = vmatprep.subr.bf16.mxu0 %v1601_v41  ;;  %1155 = vmatprep.subr.bf16.mxu1 %v1604_v42 }
  0xc4   :  { %1074 = vmatpush1.bf16.msra.mxu0 %v1599_v43  ;;  %1156 = vmatpush1.bf16.msra.mxu1 %v1602_v44  ;;  %v1671_v44 = vld [vmem:[%s2317_s2 + $0x200] ss:$16 sps:$4 sm:$0xff]  }
  0xc5   :  { %1075 = vmatprep.subr.bf16.mxu0 %v1607_v46  ;;  %1157 = vmatprep.subr.bf16.mxu1 %v1610_v47  ;;  %v1674_v46 = vld [vmem:[%s2317_s2 + $0x208] ss:$16 sps:$4 sm:$0xff]  }
  0xc8   :  { %1076 = vmatpush1.bf16.msra.mxu0 %v1605_v48  ;;  %1158 = vmatpush1.bf16.msra.mxu1 %v1608_v50  ;;  %v1679_v50 = vld [vmem:[%s2317_s2 + $0x224] ss:$16 sps:$4 sm:$0xff]  }
  0xc9   :  { %1077 = vmatprep.subr.bf16.mxu0 %v1613_v51  ;;  %1159 = vmatprep.subr.bf16.mxu1 %v1616_v52  ;;  %v1682_v51 = vld [vmem:[%s2317_s2 + $0x22c] ss:$16 sps:$4 sm:$0xff]  }
  0xcc   :  { %1078 = vmatpush1.bf16.msra.mxu0 %v1611_v53  ;;  %1160 = vmatpush1.bf16.msra.mxu1 %v1614_v54  ;;  %v1677_v54 = vld [vmem:[%s2317_s2 + $0x220] ss:$16 sps:$4 sm:$0xff]  }
  0xcd   :  { %1079 = vmatprep.subr.bf16.mxu0 %v1619_v55  ;;  %1161 = vmatprep.subr.bf16.mxu1 %v1622_v56  ;;  %v1680_v55 = vld [vmem:[%s2317_s2 + $0x228] ss:$16 sps:$4 sm:$0xff]  }
  0xd0   :  { %1080 = vmatpush1.bf16.msra.mxu0 %v1617_v57  ;;  %1162 = vmatpush1.bf16.msra.mxu1 %v1620_v58  ;;  %v1685_v58 = vld [vmem:[%s2317_s2 + $0x244] ss:$16 sps:$4 sm:$0xff]  }
  0xd1   :  { %1081 = vmatprep.subr.bf16.mxu0 %v1625_v59  ;;  %1163 = vmatprep.subr.bf16.mxu1 %v1628_v60  ;;  %v1688_v60 = vld [vmem:[%s2317_s2 + $0x24c] ss:$16 sps:$4 sm:$0xff]  }
  0xd4   :  { %1082 = vmatpush1.bf16.msra.mxu0 %v1623_v61  ;;  %1164 = vmatpush1.bf16.msra.mxu1 %v1626_v62  ;;  %v1683_v61 = vld [vmem:[%s2317_s2 + $0x240] ss:$16 sps:$4 sm:$0xff]   ;;  %v1686_v62 = vld [vmem:[%s2317_s2 + $0x248] ss:$16 sps:$4 sm:$0xff]  }
  0xd5   :  { %1083 = vmatprep.subr.bf16.mxu0 %v1631_v63  ;;  %1165 = vmatprep.subr.bf16.mxu1 %v1634_v0  ;;  %v1691_v63 = vld [vmem:[%s2317_s2 + $0x264] ss:$16 sps:$4 sm:$0xff]   ;;  %v1694_v0 = vld [vmem:[%s2317_s2 + $0x26c] ss:$16 sps:$4 sm:$0xff]  }
  0xd8   :  { %1084 = vmatpush1.bf16.msra.mxu0 %v1629_v1  ;;  %1166 = vmatpush1.bf16.msra.mxu1 %v1632_v2  ;;  %v1689_v1 = vld [vmem:[%s2317_s2 + $0x260] ss:$16 sps:$4 sm:$0xff]   ;;  %v1692_v2 = vld [vmem:[%s2317_s2 + $0x268] ss:$16 sps:$4 sm:$0xff]  }
  0xd9   :  { %1085 = vmatprep.subr.bf16.mxu0 %v1637_v3  ;;  %1167 = vmatprep.subr.bf16.mxu1 %v1640_v4  ;;  %v1697_v3 = vld [vmem:[%s2317_s2 + $0x284] ss:$16 sps:$4 sm:$0xff]   ;;  %v1700_v4 = vld [vmem:[%s2317_s2 + $0x28c] ss:$16 sps:$4 sm:$0xff]  }
  0xdc   :  { %1086 = vmatpush1.bf16.msra.mxu0 %v1635_v5  ;;  %1168 = vmatpush1.bf16.msra.mxu1 %v1638_v6  ;;  %v1695_v5 = vld [vmem:[%s2317_s2 + $0x280] ss:$16 sps:$4 sm:$0xff]   ;;  %v1698_v6 = vld [vmem:[%s2317_s2 + $0x288] ss:$16 sps:$4 sm:$0xff]  }
  0xdd   :  { %1087 = vmatprep.subr.bf16.mxu0 %v1643_v7  ;;  %1169 = vmatprep.subr.bf16.mxu1 %v1646_v8  ;;  %v1703_v7 = vld [vmem:[%s2317_s2 + $0x2a4] ss:$16 sps:$4 sm:$0xff]   ;;  %v1706_v8 = vld [vmem:[%s2317_s2 + $0x2ac] ss:$16 sps:$4 sm:$0xff]  }
  0xe0   :  { %1088 = vmatpush1.bf16.msra.mxu0 %v1641_v9  ;;  %1170 = vmatpush1.bf16.msra.mxu1 %v1644_v10  ;;  %v1701_v9 = vld [vmem:[%s2317_s2 + $0x2a0] ss:$16 sps:$4 sm:$0xff]   ;;  %v1704_v10 = vld [vmem:[%s2317_s2 + $0x2a8] ss:$16 sps:$4 sm:$0xff]  }
  0xe1   :  { %1089 = vmatprep.subr.bf16.mxu0 %v1649_v11  ;;  %1171 = vmatprep.subr.bf16.mxu1 %v1652_v12  ;;  %v1709_v11 = vld [vmem:[%s2317_s2 + $0x2c4] ss:$16 sps:$4 sm:$0xff]   ;;  %v1712_v12 = vld [vmem:[%s2317_s2 + $0x2cc] ss:$16 sps:$4 sm:$0xff]  }
  0xe4   :  { %1090 = vmatpush1.bf16.msra.mxu0 %v1647_v13  ;;  %1172 = vmatpush1.bf16.msra.mxu1 %v1650_v14  ;;  %v1707_v13 = vld [vmem:[%s2317_s2 + $0x2c0] ss:$16 sps:$4 sm:$0xff]   ;;  %v1710_v14 = vld [vmem:[%s2317_s2 + $0x2c8] ss:$16 sps:$4 sm:$0xff]  }
  0xe5   :  { %1091 = vmatprep.subr.bf16.mxu0 %v1655_v15  ;;  %1173 = vmatprep.subr.bf16.mxu1 %v1658_v16  ;;  %v1715_v15 = vld [vmem:[%s2317_s2 + $0x2e4] ss:$16 sps:$4 sm:$0xff]   ;;  %v1718_v16 = vld [vmem:[%s2317_s2 + $0x2ec] ss:$16 sps:$4 sm:$0xff]  }
  0xe8   :  { %1092 = vmatpush1.bf16.msra.mxu0 %v1653_v17  ;;  %1174 = vmatpush1.bf16.msra.mxu1 %v1656_v18  ;;  %v1713_v17 = vld [vmem:[%s2317_s2 + $0x2e0] ss:$16 sps:$4 sm:$0xff]   ;;  %v1716_v18 = vld [vmem:[%s2317_s2 + $0x2e8] ss:$16 sps:$4 sm:$0xff]  }
  0xe9   :  { %1093 = vmatprep.subr.bf16.mxu0 %v1661_v19  ;;  %1175 = vmatprep.subr.bf16.mxu1 %v1664_v20  ;;  %v1721_v19 = vld [vmem:[%s2317_s2 + $0x304] ss:$16 sps:$4 sm:$0xff]   ;;  %v1724_v20 = vld [vmem:[%s2317_s2 + $0x30c] ss:$16 sps:$4 sm:$0xff]  }
  0xec   :  { %1094 = vmatpush1.bf16.msra.mxu0 %v1659_v21  ;;  %1176 = vmatpush1.bf16.msra.mxu1 %v1662_v22  ;;  %v1719_v21 = vld [vmem:[%s2317_s2 + $0x300] ss:$16 sps:$4 sm:$0xff]   ;;  %v1722_v22 = vld [vmem:[%s2317_s2 + $0x308] ss:$16 sps:$4 sm:$0xff]  }
  0xed   :  { %1095 = vmatprep.subr.bf16.mxu0 %v1667_v23  ;;  %1177 = vmatprep.subr.bf16.mxu1 %v1670_v24  ;;  %v1727_v23 = vld [vmem:[%s2317_s2 + $0x324] ss:$16 sps:$4 sm:$0xff]   ;;  %v1730_v24 = vld [vmem:[%s2317_s2 + $0x32c] ss:$16 sps:$4 sm:$0xff]  }
  0xf0   :  { %1096 = vmatpush1.bf16.msra.mxu0 %v1665_v25  ;;  %1178 = vmatpush1.bf16.msra.mxu1 %v1668_v26  ;;  %v1725_v25 = vld [vmem:[%s2317_s2 + $0x320] ss:$16 sps:$4 sm:$0xff]   ;;  %v1728_v26 = vld [vmem:[%s2317_s2 + $0x328] ss:$16 sps:$4 sm:$0xff]  }
  0xf1   :  { %1106 = vmatprep.subr.bf16.mxu0 %v1673_v27  ;;  %1188 = vmatprep.subr.bf16.mxu1 %v1676_v28  ;;  %v1733_v27 = vld [vmem:[%s2317_s2 + $0x344] ss:$16 sps:$4 sm:$0xff]   ;;  %v1736_v28 = vld [vmem:[%s2317_s2 + $0x34c] ss:$16 sps:$4 sm:$0xff]  }
 0x186   :  { %v241_v29 = vpop.f32.mrb[0].mxu0  ;;  %v282_v30 = vpop.f32.mrb[0].mxu1 }
 0x187   :  { %v2067_v31 = vmax.f32 %v241_v29, 0.0  ;;  %v243_v32 = vpop.f32.mrb[1].mxu0  ;;  %v284_v33 = vpop.f32.mrb[1].mxu1  ;;  %v2069_v34 = vmax.f32 %v282_v30, 0.0  ;;  %v1731_v29 = vld [vmem:[%s2317_s2 + $0x340] ss:$16 sps:$4 sm:$0xff]  }
 0x188   :  { %v2071_v35 = vmax.f32 %v243_v32, 0.0  ;;  %v245_v36 = vpop.f32.mrb[2].mxu0  ;;  %v286_v37 = vpop.f32.mrb[2].mxu1  ;;  %v2075_v39 = vmax.f32 %v284_v33, 0.0  ;;  %v1734_v30 = vld [vmem:[%s2317_s2 + $0x348] ss:$16 sps:$4 sm:$0xff]  }
 0x189   :  { %v1229_v38 = vmul.f32 %v2067_v31, %v2067_v31  ;;  %v246_v40 = vpop.f32.mrb[3].mxu0  ;;  %v287_v41 = vpop.f32.mrb[3].mxu1  ;;  %v293_v47 = vpack.c.bf16 %v2067_v31, %v2067_v31  ;;  %v1231_v48 = vmul.f32 %v2069_v34, %v2069_v34  ;;  %v1739_v32 = vld [vmem:[%s2317_s2 + $0x364] ss:$16 sps:$4 sm:$0xff]   ;;  %v1742_v33 = vld [vmem:[%s2317_s2 + $0x36c] ss:$16 sps:$4 sm:$0xff]  }
 0x18a   :  { %v1230_v42 = vmul.f32 %v2071_v35, %v2071_v35  ;;  %v294_v43 = vpack.c.bf16 %v2071_v35, %v2071_v35  ;;  %v296_v53 = vpack.c.bf16 %v2075_v39, %v2075_v39  ;;  %v1232_v56 = vmul.f32 %v2075_v39, %v2075_v39  ;;  %v1737_v36 = vld [vmem:[%s2317_s2 + $0x360] ss:$16 sps:$4 sm:$0xff]   ;;  %v1740_v37 = vld [vmem:[%s2317_s2 + $0x368] ss:$16 sps:$4 sm:$0xff]   ;;  %v1748_v40 = vld [vmem:[%s2317_s2 + $0x38c] ss:$16 sps:$4 sm:$0xff]  }
 0x18b   :  { %v1743_v41 = vld [vmem:[%s2317_s2 + $0x380] ss:$16 sps:$4 sm:$0xff]  }
 0x18c   :  { %1097 = vmatprep.mubr.bf16.mxu0 %v294_v43  ;;  %1179 = vmatprep.mubr.bf16.mxu1 %v294_v43  ;;  %v1233_v52 = vadd.f32 %v1230_v42, %v1229_v38  ;;  %v1745_v38 = vld [vmem:[%s2317_s2 + $0x384] ss:$16 sps:$4 sm:$0xff]   ;;  %v1746_v42 = vld [vmem:[%s2317_s2 + $0x388] ss:$16 sps:$4 sm:$0xff]  }
 0x18d   :  { %1098 = vmatmul.mubr.bf16.vlgmr.msra.gmra.mrb[4].mxu0 %v293_v47  ;;  %1180 = vmatmul.mubr.bf16.vlgmr.msra.gmra.mrb[4].mxu1 %v293_v47  ;;  %v1751_v43 = vld [vmem:[%s2317_s2 + $0x3a4] ss:$16 sps:$4 sm:$0xff]   ;;  %v1752_v47 = vld [vmem:[%s2317_s2 + $0x3a8] ss:$16 sps:$4 sm:$0xff]  }
 0x18e   :  { %1107 = vmatpush1.bf16.msra.mxu0 %v1671_v44  ;;  %1189 = vmatpush1.bf16.msra.mxu1 %v1674_v46  ;;  %v1234_v57 = vadd.f32 %v1233_v52, %v1231_v48  ;;  %v1754_v44 = vld [vmem:[%s2317_s2 + $0x3ac] ss:$16 sps:$4 sm:$0xff]   ;;  %v1749_v46 = vld [vmem:[%s2317_s2 + $0x3a0] ss:$16 sps:$4 sm:$0xff]   ;;  %v1757_v48 = vld [vmem:[%s2317_s2 + $0x3c4] ss:$16 sps:$4 sm:$0xff]  }
 0x18f   :  { %1138 = vmatprep.mubr.bf16.mxu0 %v296_v53  ;;  %1220 = vmatprep.mubr.bf16.mxu1 %v296_v53  ;;  %v1758_v52 = vld [vmem:[%s2317_s2 + $0x3c8] ss:$16 sps:$4 sm:$0xff]   ;;  %v1763_v53 = vld [vmem:[%s2317_s2 + $0x3e4] ss:$16 sps:$4 sm:$0xff]  }
 0x190   :  { %1108 = vmatprep.subr.bf16.mxu0 %v1679_v50  ;;  %1190 = vmatprep.subr.bf16.mxu1 %v1682_v51  ;;  %v1235_v59 = vadd.f32 %v1234_v57, %v1232_v56  ;;  %v1760_v50 = vld [vmem:[%s2317_s2 + $0x3cc] ss:$16 sps:$4 sm:$0xff]   ;;  %v1755_v51 = vld [vmem:[%s2317_s2 + $0x3c0] ss:$16 sps:$4 sm:$0xff]   ;;  %v1764_v56 = vld [vmem:[%s2317_s2 + $0x3e8] ss:$16 sps:$4 sm:$0xff]   ;;  %v295_v57 = vpack.c.bf16 %v2069_v34, %v2069_v34 }
 0x192   :  { %1109 = vmatpush1.bf16.msra.mxu0 %v1677_v54  ;;  %1191 = vmatpush1.bf16.msra.mxu1 %v1680_v55  ;;  %v1766_v54 = vld [vmem:[%s2317_s2 + $0x3ec] ss:$16 sps:$4 sm:$0xff]   ;;  %v1761_v55 = vld [vmem:[%s2317_s2 + $0x3e0] ss:$16 sps:$4 sm:$0xff]   ;;  %s1796_s2 = smov [#allocation3]  }
 0x193   :  { %1236 = vadd.xlane.f32.xlu0 %v1235_v59  ;;  %1110 = vmatprep.subr.bf16.mxu0 %v1685_v58  ;;  %s1389_s14 = sshll.u32 %s1796_s2, 4  ;;  %s1390_s14 = int_to_ptr.vmem [resolvable:$true] %s1389_s14 }
 0x194   :  { %1192 = vmatprep.subr.bf16.mxu1 %v1688_v60  ;;  %s1769_s15 = scalar_lea.vmem %s1390_s14, 512  ;;  %p1774_p1 = scmp.lt.s32.totalorder %s1390_s14, %s1390_s14 }
 0x195   :  { %p1770_p0 = scmp.ne.s32.totalorder %s1390_s14, %s1769_s15  ;;  %p1775_p2 = scmp.lt.s32.totalorder %s1769_s15, %s1769_s15 }
 0x196   :  { %1111 = vmatpush1.bf16.msra.mxu0 %v1683_v61  ;;  %1193 = vmatpush1.bf16.msra.mxu1 %v1686_v62 }
 0x197   :  { %1112 = vmatprep.subr.bf16.mxu0 %v1691_v63  ;;  %1194 = vmatprep.subr.bf16.mxu1 %v1694_v0  ;;  %p1776_p3 = por %p1775_p2, %p1774_p1 }
 0x199   :  { %p1777_p4 = pnand %p1776_p3, %p1770_p0 }
 0x19a   :  { %1113 = vmatpush1.bf16.msra.mxu0 %v1689_v1  ;;  %1195 = vmatpush1.bf16.msra.mxu1 %v1692_v2 }
 0x19b   :  { %1114 = vmatprep.subr.bf16.mxu0 %v1697_v3  ;;  %1196 = vmatprep.subr.bf16.mxu1 %v1700_v4 }
 0x19e   :  { %1115 = vmatpush1.bf16.msra.mxu0 %v1695_v5  ;;  %1197 = vmatpush1.bf16.msra.mxu1 %v1698_v6 }
 0x19f   :  { %1116 = vmatprep.subr.bf16.mxu0 %v1703_v7  ;;  %1198 = vmatprep.subr.bf16.mxu1 %v1706_v8 }
 0x1a2   :  { %1117 = vmatpush1.bf16.msra.mxu0 %v1701_v9  ;;  %1199 = vmatpush1.bf16.msra.mxu1 %v1704_v10 }
 0x1a3   :  { %1118 = vmatprep.subr.bf16.mxu0 %v1709_v11  ;;  %1200 = vmatprep.subr.bf16.mxu1 %v1712_v12 }
 0x1a6   :  { %1119 = vmatpush1.bf16.msra.mxu0 %v1707_v13  ;;  %1201 = vmatpush1.bf16.msra.mxu1 %v1710_v14 }
 0x1a7   :  { %1120 = vmatprep.subr.bf16.mxu0 %v1715_v15  ;;  %1202 = vmatprep.subr.bf16.mxu1 %v1718_v16 }
 0x1aa   :  { %1121 = vmatpush1.bf16.msra.mxu0 %v1713_v17  ;;  %1203 = vmatpush1.bf16.msra.mxu1 %v1716_v18 }
 0x1ab   :  { %1122 = vmatprep.subr.bf16.mxu0 %v1721_v19  ;;  %1204 = vmatprep.subr.bf16.mxu1 %v1724_v20 }
 0x1ae   :  { %1123 = vmatpush1.bf16.msra.mxu0 %v1719_v21  ;;  %1205 = vmatpush1.bf16.msra.mxu1 %v1722_v22 }
 0x1af   :  { %1124 = vmatprep.subr.bf16.mxu0 %v1727_v23  ;;  %1206 = vmatprep.subr.bf16.mxu1 %v1730_v24 }
 0x1b2   :  { %1125 = vmatpush1.bf16.msra.mxu0 %v1725_v25  ;;  %1207 = vmatpush1.bf16.msra.mxu1 %v1728_v26 }
 0x1b3   :  { %1126 = vmatprep.subr.bf16.mxu0 %v1733_v27  ;;  %1208 = vmatprep.subr.bf16.mxu1 %v1736_v28 }
 0x1b6   :  { %1127 = vmatpush1.bf16.msra.mxu0 %v1731_v29  ;;  %1209 = vmatpush1.bf16.msra.mxu1 %v1734_v30 }
 0x1b7   :  { %1128 = vmatprep.subr.bf16.mxu0 %v1739_v32  ;;  %1210 = vmatprep.subr.bf16.mxu1 %v1742_v33 }
 0x1ba   :  { %1129 = vmatpush1.bf16.msra.mxu0 %v1737_v36  ;;  %1211 = vmatpush1.bf16.msra.mxu1 %v1740_v37 }
 0x1bb   :  { %1130 = vmatprep.subr.bf16.mxu0 %v1745_v38  ;;  %1212 = vmatprep.subr.bf16.mxu1 %v1748_v40 }
 0x1be   :  { %1131 = vmatpush1.bf16.msra.mxu0 %v1743_v41  ;;  %1213 = vmatpush1.bf16.msra.mxu1 %v1746_v42 }
 0x1bf   :  { %1132 = vmatprep.subr.bf16.mxu0 %v1751_v43  ;;  %1214 = vmatprep.subr.bf16.mxu1 %v1754_v44 }
 0x1c2   :  { %1133 = vmatpush1.bf16.msra.mxu0 %v1749_v46  ;;  %1215 = vmatpush1.bf16.msra.mxu1 %v1752_v47 }
 0x1c3   :  { %1134 = vmatprep.subr.bf16.mxu0 %v1757_v48  ;;  %1216 = vmatprep.subr.bf16.mxu1 %v1760_v50 }
 0x1c6   :  { %1135 = vmatpush1.bf16.msra.mxu0 %v1755_v51  ;;  %1217 = vmatpush1.bf16.msra.mxu1 %v1758_v52 }
 0x1c7   :  { %1136 = vmatprep.subr.bf16.mxu0 %v1763_v53  ;;  %1218 = vmatprep.subr.bf16.mxu1 %v1766_v54 }
 0x1ca   :  { %1137 = vmatpush1.bf16.msra.mxu0 %v1761_v55  ;;  %1219 = vmatpush1.bf16.msra.mxu1 %v1764_v56 }
 0x1cd   :  { %1139 = vmatmul.mubr.bf16.vlgmr.msra.gmra.mrb[4].mxu0 %v295_v57  ;;  %1221 = vmatmul.mubr.bf16.vlgmr.msra.gmra.mrb[4].mxu1 %v295_v57 }
 0x220   :  { %v1237_v58 = vpop.xlane.xlu0 %1236 }
 0x221   :  { %v1238_v59 = vmax.f32 %v1237_v58, 1e-24 }
 0x223   :  { %1767 = vrsqrt.f32 %v1238_v59 }
 0x22d   :  { %v1768_v60 = vpop.eup %1767 }
 0x22e   :  { %v1240_v61 = vmul.f32 %v1768_v60, %v2067_v31  ;;  %v1241_v62 = vmul.f32 %v1768_v60, %v2071_v35  ;;  %v1242_v63 = vmul.f32 %v1768_v60, %v2069_v34  ;;  %v1243_v0 = vmul.f32 %v1768_v60, %v2075_v39 }
 0x230   :  { %1244 = vst [vmem:[#allocation3] sm:$0xff] %v1240_v61  ;;  %1245 = vst [vmem:[#allocation3 + $0x8] sm:$0xff] %v1241_v62 }
 0x231   :  { %1246 = vst [vmem:[#allocation3 + $0x10] sm:$0xff] %v1242_v63  ;;  %1247 = vst [vmem:[#allocation3 + $0x18] sm:$0xff] %v1243_v0 }
 0x232   :  { %1780 = shalt.err (!%p1777_p4)
}
 0x233   :  { %s1781_s18 = scalar_lea.hbm %s2318_s3, 512 }
 0x234   :  { %p1782_p5 = scmp.ne.s32.totalorder %s2318_s3, %s1781_s18  ;;  %p1785_p6 = scmp.lt.u32.totalorder %s1781_s18, %s2318_s3 }
 0x236   :  { %p1787_p7 = pnand %p1785_p6, %p1782_p5 }
 0x238   :  { %1790 = shalt.err (!%p1787_p7)
}
 0x239   :  { %1392 = dma.vmem_to_hbm [thread:$0]  %s1390_s14, 512, %s2318_s3, [#allocation4]   ;;  %v1797_v31 = vmov 1966171168   ;;  %vm1321_vm10 = vcmp.lt.s32.totalorder %v115_v45, 512 }
 0x23a   :  { %v1297_v34 = vunpack.c.l.s4 %v1797_v31 }
 0x23c   :  { %v1298_v35 = vunpack.c.0.s8 %v1297_v34 }
 0x23e   :  { %v2294_v2 = vsub.s32 %v1298_v35, %v1861_v49 }
 0x2a0   :  { %v1140_v39 = vpop.f32.mrb[4].mxu0  ;;  %v1222_v1 = vpop.f32.mrb[4].mxu1 }
 0x2a1   :  { %v1266_v3 = vrot.slane %v1140_v39, 4  ;;  %v1324_v4 = vmul.f32 %v1140_v39, %v1140_v39  ;;  %v1278_v5 = vrot.slane %v1222_v1, 4  ;;  %v1326_v6 = vmul.f32 %v1222_v1, %v1222_v1  ;;  %v1142_v7 = vpop.f32.mrb[5].mxu0  ;;  %v1224_v8 = vpop.f32.mrb[5].mxu1 }
 0x2a2   :  { %v1540_v9 = vpack.c.bf16 %v1142_v7, %v1140_v39  ;;  %v1272_v10 = vrot.slane %v1142_v7, 4  ;;  %v1325_v11 = vmul.f32 %v1142_v7, %v1142_v7  ;;  %v1541_v12 = vpack.c.bf16 %v1224_v8, %v1222_v1  ;;  %v1144_v13 = vpop.f32.mrb[6].mxu0  ;;  %v1226_v14 = vpop.f32.mrb[6].mxu1 }
 0x2a3   :  { %v1267_v15 = vadd.f32 %v1266_v3, %v1140_v39  ;;  %v1328_v16 = vrot.slane %v1324_v4, 4  ;;  %v1279_v17 = vadd.f32 %v1278_v5, %v1222_v1  ;;  %v1340_v18 = vrot.slane %v1326_v6, 4  ;;  %v1145_v19 = vpop.f32.mrb[7].mxu0  ;;  %v1227_v20 = vpop.f32.mrb[7].mxu1 }
 0x2a4   :  { %1264 = vst [vmem:[%s2319_s4] sm:$0xff] %v1540_v9  ;;  %v1273_v49 = vadd.f32 %v1272_v10, %v1142_v7  ;;  %v1334_v21 = vrot.slane %v1325_v11, 4  ;;  %1265 = vst [vmem:[%s2319_s4 + $0x8] sm:$0xff] %v1541_v12  ;;  %v1284_v22 = vrot.slane %v1224_v8, 4  ;;  %v1327_v23 = vmul.f32 %v1224_v8, %v1224_v8 }
 0x2a5   :  { %v1268_v24 = vrot.slane %v1267_v15, 2  ;;  %v1329_v25 = vadd.f32 %v1328_v16, %v1324_v4  ;;  %v1280_v26 = vrot.slane %v1279_v17, 2  ;;  %v1341_v27 = vadd.f32 %v1340_v18, %v1326_v6 }
 0x2a6   :  { %v1274_v28 = vrot.slane %v1273_v49, 2  ;;  %v1335_v29 = vadd.f32 %v1334_v21, %v1325_v11  ;;  %v1285_v30 = vadd.f32 %v1284_v22, %v1224_v8  ;;  %v1346_v32 = vrot.slane %v1327_v23, 4 }
 0x2a7   :  { %v1269_v33 = vadd.f32 %v1268_v24, %v1267_v15  ;;  %v1330_v36 = vrot.slane %v1329_v25, 2  ;;  %v1281_v37 = vadd.f32 %v1280_v26, %v1279_v17  ;;  %v1342_v38 = vrot.slane %v1341_v27, 2 }
 0x2a8   :  { %v1275_v40 = vadd.f32 %v1274_v28, %v1273_v49  ;;  %v1336_v41 = vrot.slane %v1335_v29, 2  ;;  %v1286_v42 = vrot.slane %v1285_v30, 2  ;;  %v1347_v43 = vadd.f32 %v1346_v32, %v1327_v23 }
 0x2a9   :  { %v1270_v44 = vrot.slane %v1269_v33, 1  ;;  %v1331_v46 = vadd.f32 %v1330_v36, %v1329_v25  ;;  %v1282_v47 = vrot.slane %v1281_v37, 1  ;;  %v1343_v48 = vadd.f32 %v1342_v38, %v1341_v27 }
 0x2aa   :  { %v1276_v50 = vrot.slane %v1275_v40, 1  ;;  %v1337_v51 = vadd.f32 %v1336_v41, %v1335_v29  ;;  %v1287_v52 = vadd.f32 %v1286_v42, %v1285_v30  ;;  %v1348_v53 = vrot.slane %v1347_v43, 2 }
 0x2ab   :  { %v1271_v54 = vadd.f32 %v1270_v44, %v1269_v33  ;;  %v1332_v55 = vrot.slane %v1331_v46, 1  ;;  %v1283_v56 = vadd.f32 %v1282_v47, %v1281_v37  ;;  %v1344_v57 = vrot.slane %v1343_v48, 1 }
 0x2ac   :  { %v1277_v58 = vadd.f32 %v1276_v50, %v1275_v40  ;;  %v1338_v59 = vrot.slane %v1337_v51, 1  ;;  %v1288_v60 = vrot.slane %v1287_v52, 1  ;;  %v1349_v61 = vadd.f32 %v1348_v53, %v1347_v43 }
 0x2ad   :  { %v1333_v62 = vadd.f32 %v1332_v55, %v1331_v46  ;;  %v1345_v63 = vadd.f32 %v1344_v57, %v1343_v48 }
 0x2ae   :  { %v1294_v0 = vcombine.low %v1271_v54, %v1277_v58  ;;  %v1339_v31 = vadd.f32 %v1338_v59, %v1337_v51  ;;  %v1289_v34 = vadd.f32 %v1288_v60, %v1287_v52  ;;  %v1350_v35 = vrot.slane %v1349_v61, 1 }
 0x2b0   :  { %v1302_v39 = vrot.slane %v1294_v0, %v2294_v2  ;;  %v1356_v1 = vcombine.low %v1333_v62, %v1339_v31  ;;  %v1295_v3 = vcombine.low %v1283_v56, %v1289_v34  ;;  %v1351_v4 = vadd.f32 %v1350_v35, %v1349_v61 }
 0x2b2   :  { %v1364_v5 = vrot.slane %v1356_v1, %v2294_v2  ;;  %v1309_v6 = vrot.slane %v1295_v3, %v2294_v2  ;;  %v1357_v7 = vcombine.low %v1345_v63, %v1351_v4 }
 0x2b4   :  { %v1310_v8 = vcombine.low %v1302_v39, %v1309_v6  ;;  %v1371_v9 = vrot.slane %v1357_v7, %v2294_v2 }
 0x2b6   :  { %v1317_v10 = vrot.slane %v1310_v8, %v2294_v2  ;;  %v1372_v11 = vcombine.low %v1364_v5, %v1371_v9 }
 0x2b8   :  { %1323 = vst.msk [vmem:[%s2320_s5] ss:$2 sm:$0xf] %vm1321_vm10, %v1317_v10  ;;  %v1379_v12 = vrot.slane %v1372_v11, %v2294_v2 }
 0x2ba   :  { %1539 = vst.msk [vmem:[%s2320_s5 + $0x1] ss:$2 sm:$0xf] %vm1321_vm10, %v1379_v12 }
 0x2bb   :  { %1791 = dma.done.wait [#allocation4], 512  }
 0x2bc   :  { %1792 = vsyncadd [#allocation4], 4294966784 }
 0x2bd   :  { %1404 = vsyncpa [#allocation4], 1 }

</bundles_post_ra>
